<compile_context>
chip_gen: v7x
topology: tpu7x:2x2x1
jax: 0.10.0
libtpu: 0.0.40
codegen_flags: <defaults>
</compile_context>

<pallas_src>
import jax
import jax.numpy as jnp
from jax.experimental import pallas as pl
from jax.experimental.pallas import tpu as pltpu

EPS = 1e-5
LANE = 128
# Safe on every generation: below v7x's 64 MiB physical VMEM, above the
# 16/32 MiB scoped defaults.
_VMEM_LIMIT = 48 * 1024 * 1024


def _round_up(x, m):
    return (x + m - 1) // m * m


def _pick_row_tile(m, target):
    """Largest multiple of 8 that divides m and is <= target (fallback: m)."""
    t = min(target, m)
    t -= t % 8
    while t > 8 and m % t:
        t -= 8
    return t if (t > 0 and m % t == 0) else m


def _compiler_params(semantics):
    return pltpu.CompilerParams(dimension_semantics=semantics,
                                vmem_limit_bytes=_VMEM_LIMIT)


# --------------------------- stage kernels ----------------------------------

def _conv1_kernel(x_ref, w_ref, y_ref, st_ref):
    """1x1 conv (matmul) + bn1 sum / sum-of-squares accumulation."""
    y = jnp.dot(x_ref[...], w_ref[...], preferred_element_type=jnp.float32)
    s = jnp.sum(y, axis=0, keepdims=True)
    ss = jnp.sum(y * y, axis=0, keepdims=True)

    @pl.when(pl.program_id(0) == 0)
    def _():
        st_ref[...] = jnp.zeros_like(st_ref)

    st_ref[...] += jnp.concatenate([s, ss], axis=0)
    y_ref[...] = y


def _conv2_kernel(y1_ref, aff1_ref, w2_ref, y2_ref, st_ref):
    """bn1 (fused scale/shift) + ReLU + 3x3 conv as ONE im2col matmul + bn2 stats.

    Gridded over images (one image per step) so the 3x3 stencil needs no halo.
    """
    _, H, W, Wp = y1_ref.shape
    cdt = w2_ref.dtype
    scale = aff1_ref[0:1, :]
    shift = aff1_ref[1:2, :]
    # Normalize + ReLU in f32, cast ONCE to the compute dtype before building
    # the 9x patches buffer (halves the dominant VMEM buffer on the bf16 path).
    a = jnp.maximum(y1_ref[0] * scale + shift, 0.0).astype(cdt)        # (H, W, Wp)
    # Zero padding (stride=1, padding=1) built on resident values.
    zc = jnp.zeros((H, 1, Wp), cdt)
    a = jnp.concatenate([zc, a, zc], axis=1)                           # (H, W+2, Wp)
    zr = jnp.zeros((1, W + 2, Wp), cdt)
    a = jnp.concatenate([zr, a, zr], axis=0)                           # (H+2, W+2, Wp)
    taps = [a[kh:kh + H, kw:kw + W, :] for kh in range(3) for kw in range(3)]
    patches = jnp.concatenate(taps, axis=-1).reshape(H * W, 9 * Wp)    # cdt
    y = jnp.dot(patches, w2_ref[...], preferred_element_type=jnp.float32)

    s = jnp.sum(y, axis=0, keepdims=True)
    ss = jnp.sum(y * y, axis=0, keepdims=True)

    @pl.when(pl.program_id(0) == 0)
    def _():
        st_ref[...] = jnp.zeros_like(st_ref)

    st_ref[...] += jnp.concatenate([s, ss], axis=0)
    y2_ref[...] = y                                                    # (H*W, Wp) f32


def _conv3_kernel(y2_ref, aff2_ref, w3_ref, y3_ref, st_ref):
    """bn2 (fused) + ReLU + 1x1 conv + bn3 stats."""
    cdt = w3_ref.dtype
    scale = aff2_ref[0:1, :]
    shift = aff2_ref[1:2, :]
    a = jnp.maximum(y2_ref[...] * scale + shift, 0.0).astype(cdt)
    y = jnp.dot(a, w3_ref[...], preferred_element_type=jnp.float32)

    s = jnp.sum(y, axis=0, keepdims=True)
    ss = jnp.sum(y * y, axis=0, keepdims=True)

    @pl.when(pl.program_id(0) == 0)
    def _():
        st_ref[...] = jnp.zeros_like(st_ref)

    st_ref[...] += jnp.concatenate([s, ss], axis=0)
    y3_ref[...] = y


def _finalize_kernel(y3_ref, xres_ref, aff3_ref, o_ref):
    """bn3 (fused) + identity residual add + ReLU.  Pure map -> 'parallel'."""
    scale = aff3_ref[0:1, :]
    shift = aff3_ref[1:2, :]
    o_ref[...] = jnp.maximum(y3_ref[...] * scale + shift + xres_ref[...], 0.0)


# ------------------------------- wrapper -------------------------------------

def _affine_from_stats(stats, gamma, beta, m):
    """Two-phase BN finalize: fold mean/var/gamma/beta into scale & shift."""
    mean = stats[0] / m
    var = jnp.maximum(stats[1] / m - mean * mean, 0.0)   # clamp: single-pass var
    scale = gamma * jax.lax.rsqrt(var + EPS)
    shift = beta - mean * scale
    return jnp.stack([scale, shift], axis=0).astype(jnp.float32)   # (2, C)


def bottleneck(x, params, compute_dtype=jnp.bfloat16, row_tile=None):
    """Bottleneck forward.  x: (N, H, W, Cin) f32, NHWC.

    compute_dtype: MXU operand dtype.  bf16 (default, f32 accumulation + f32
    BN stats + f32 residual) is recommended on v5e/v6e/v7x; f32 gives exact
    PyTorch semantics.  row_tile: rows (N*H*W pixels) per grid step for the
    1x1-conv stages; target ~1-2K on v7x (64 MiB VMEM), ~2-4K on v5e/v6e.
    """
    N, H, W, Cin = x.shape
    w1, g1, b1, w2, g2, b2, w3, g3, b3 = params
    width = w1.shape[1]
    Cout = w3.shape[1]
    assert Cin == Cout, "identity residual requires inplanes == planes * expansion"
    M = N * H * W
    cdt = jnp.dtype(compute_dtype)
    itm = cdt.itemsize

    # ---- lane-dense channel padding (multiples of 128) ----------------------
    Cip = _round_up(Cin, LANE)
    Wp = _round_up(width, LANE)
    Cp = _round_up(Cout, LANE)
    assert Cip == Cp

    pad2 = lambda a, r, c: jnp.pad(a, ((0, r - a.shape[0]), (0, c - a.shape[1])))
    pad1 = lambda a, c: jnp.pad(a, ((0, c - a.shape[0]),))

    w1p = pad2(w1, Cip, Wp).astype(cdt)                              # (Cip, Wp)
    w2p = jnp.pad(w2, ((0, 0), (0, 0), (0, Wp - width), (0, Wp - width)))
    w2p = w2p.reshape(9 * Wp, Wp).astype(cdt)                        # im2col, tap-major
    w3p = pad2(w3, Wp, Cp).astype(cdt)                               # (Wp, Cp)
    g1p, b1p = pad1(g1, Wp), pad1(b1, Wp)
    g2p, b2p = pad1(g2, Wp), pad1(b2, Wp)
    g3p, b3p = pad1(g3, Cp), pad1(b3, Cp)

    x_pad = jnp.pad(x, ((0, 0), (0, 0), (0, 0), (0, Cip - Cin))).reshape(M, Cip)
    x_mat = x_pad.astype(cdt)            # conv1 MXU operand
    x_res = x_pad.astype(jnp.float32)    # residual path stays f32

    if row_tile is None:
        row_tile = 1024
    TM = _pick_row_tile(M, row_tile)
    grid_rows = M // TM

    full = lambda shape: pl.BlockSpec(shape, lambda i: (0,) * len(shape))
    rows = lambda c: pl.BlockSpec((TM, c), lambda i: (i, 0))

    # ---- stage 1: conv1 (1x1) + bn1 statistics -------------------------------
    y1, st1 = pl.pallas_call(
        _conv1_kernel,
        grid=(grid_rows,),
        in_specs=[rows(Cip), full((Cip, Wp))],
        out_specs=[rows(Wp), full((2, Wp))],
        out_shape=[jax.ShapeDtypeStruct((M, Wp), jnp.float32),
                   jax.ShapeDtypeStruct((2, Wp), jnp.float32)],
        compiler_params=_compiler_params(("arbitrary",)),
        cost_estimate=pl.CostEstimate(
            flops=2 * M * Cip * Wp, transcendentals=0,
            bytes_accessed=int(M * Cip * itm + Cip * Wp * itm + M * Wp * 4 + 2 * Wp * 4)),
    )(x_mat, w1p)
    aff1 = _affine_from_stats(st1, g1p, b1p, M)

    # ---- stage 2: bn1+ReLU + conv2 (3x3 im2col) + bn2 statistics -------------
    y1_4d = y1.reshape(N, H, W, Wp)
    y2, st2 = pl.pallas_call(
        _conv2_kernel,
        grid=(N,),
        in_specs=[pl.BlockSpec((1, H, W, Wp), lambda n: (n, 0, 0, 0)),
                  full((2, Wp)), full((9 * Wp, Wp))],
        out_specs=[pl.BlockSpec((H * W, Wp), lambda n: (n, 0)), full((2, Wp))],
        out_shape=[jax.ShapeDtypeStruct((M, Wp), jnp.float32),
                   jax.ShapeDtypeStruct((2, Wp), jnp.float32)],
        compiler_params=_compiler_params(("arbitrary",)),
        cost_estimate=pl.CostEstimate(
            flops=2 * M * 9 * Wp * Wp, transcendentals=0,
            bytes_accessed=int(2 * M * Wp * 4 + 9 * Wp * Wp * itm + 4 * Wp * 4)),
    )(y1_4d, aff1, w2p)
    aff2 = _affine_from_stats(st2, g2p, b2p, M)

    # ---- stage 3: bn2+ReLU + conv3 (1x1) + bn3 statistics ---------------------
    y3, st3 = pl.pallas_call(
        _conv3_kernel,
        grid=(grid_rows,),
        in_specs=[rows(Wp), full((2, Wp)), full((Wp, Cp))],
        out_specs=[rows(Cp), full((2, Cp))],
        out_shape=[jax.ShapeDtypeStruct((M, Cp), jnp.float32),
                   jax.ShapeDtypeStruct((2, Cp), jnp.float32)],
        compiler_params=_compiler_params(("arbitrary",)),
        cost_estimate=pl.CostEstimate(
            flops=2 * M * Wp * Cp, transcendentals=0,
            bytes_accessed=int(M * Wp * 4 + Wp * Cp * itm + M * Cp * 4 + 4 * Cp * 4)),
    )(y2, aff2, w3p)
    aff3 = _affine_from_stats(st3, g3p, b3p, M)

    # ---- stage 4: bn3 + identity residual + ReLU (pure map, megacore OK) ------
    out2d = pl.pallas_call(
        _finalize_kernel,
        grid=(grid_rows,),
        in_specs=[rows(Cp), rows(Cp), full((2, Cp))],
        out_specs=rows(Cp),
        out_shape=jax.ShapeDtypeStruct((M, Cp), jnp.float32),
        compiler_params=_compiler_params(("parallel",)),
    )(y3, x_res, aff3)

    return out2d[:, :Cout].reshape(N, H, W, Cout)


# -------------------- plain-JAX reference (for checking) ---------------------

def _conv_nhwc(x, w, compute_dtype):
    dn = jax.lax.conv_dimension_numbers(x.shape, w.shape, ("NHWC", "HWIO", "NHWC"))
    return jax.lax.conv_general_dilated(
        x.astype(compute_dtype), w.astype(compute_dtype), (1, 1), "SAME",
        dimension_numbers=dn, preferred_element_type=jnp.float32)


def _bn_ref(y, gamma, beta):
    mean = jnp.mean(y, axis=(0, 1, 2), keepdims=True)
    var = jnp.mean((y - mean) ** 2, axis=(0, 1, 2), keepdims=True)
    return (y - mean) / jnp.sqrt(var + EPS) * gamma.reshape(1, 1, 1, -1) \
        + beta.reshape(1, 1, 1, -1)


def bottleneck_ref(x, params, compute_dtype=jnp.float32):
    w1, g1, b1, w2, g2, b2, w3, g3, b3 = params
    out = _conv_nhwc(x, w1[None, None], compute_dtype)
    out = jax.nn.relu(_bn_ref(out, g1, b1))
    out = _conv_nhwc(out, w2, compute_dtype)
    out = jax.nn.relu(_bn_ref(out, g2, b2))
    out = _conv_nhwc(out, w3[None, None], compute_dtype)
    out = _bn_ref(out, g3, b3)
    return jax.nn.relu(out + x)


if __name__ == "__main__":
    key = jax.random.PRNGKey(0)
    N, Hs, Ws = 2, 16, 16
    planes = 4
    inplanes = planes * 4          # downsample=None -> inplanes == planes*expansion
    width = planes                 # base_width=64, groups=1 -> width == planes
    Cout = planes * 4

    k0, k1, k2, k3 = jax.random.split(key, 4)
    x = jax.random.normal(k0, (N, Hs, Ws, inplanes), jnp.float32)

    w1 = jax.random.normal(k1, (inplanes, width), jnp.float32) / jnp.sqrt(1.0 * inplanes)
    w2 = jax.random.normal(k2, (3, 3, width, width), jnp.float32) / jnp.sqrt(9.0 * width)
    w3 = jax.random.normal(k3, (width, Cout), jnp.float32) / jnp.sqrt(1.0 * width)
    g1 = jnp.ones((width,), jnp.float32); b1 = jnp.zeros((width,), jnp.float32)
    g2 = jnp.ones((width,), jnp.float32); b2 = jnp.zeros((width,), jnp.float32)
    g3 = jnp.ones((Cout,), jnp.float32); b3 = jnp.zeros((Cout,), jnp.float32)
    params = (w1, g1, b1, w2, g2, b2, w3, g3, b3)

    # row_tile=128 -> 4 grid steps so the pipelined BN-stat accumulation is
    # actually exercised at these toy shapes.
    out_f32 = jax.block_until_ready(bottleneck(x, params, jnp.float32, row_tile=128))
    ref_f32 = bottleneck_ref(x, params, jnp.float32)
    assert out_f32.shape == (N, Hs, Ws, Cout)
    assert jnp.allclose(out_f32, ref_f32, atol=1e-3, rtol=1e-3), \
        "f32 mismatch vs JAX reference"

    # bf16 MXU-operand path (default; f32 accumulation, f32 BN stats/residual).
    out_bf16 = jax.block_until_ready(bottleneck(x, params, jnp.bfloat16, row_tile=128))
    ref_bf16 = bottleneck_ref(x, params, jnp.bfloat16)
    assert jnp.allclose(out_bf16, ref_bf16, atol=5e-2, rtol=5e-2), \
        "bf16 mismatch vs JAX reference"

    print("KERNEL_OK")
</pallas_src>

<mosaic_0001>
module attributes {stable_mosaic.version = 11 : i64} {
  func.func @_conv1_kernel(%arg0: i32, %arg1: memref<128x128xf32, #tpu.memory_space<vmem>>, %arg2: memref<128x128xf32, #tpu.memory_space<vmem>>, %arg3: memref<128x128xf32, #tpu.memory_space<vmem>>, %arg4: memref<2x128xf32, #tpu.memory_space<vmem>>) attributes {dimension_semantics = [#tpu.dimension_semantics<arbitrary>], iteration_bounds = array<i64: 4>, scalar_prefetch = 0 : i64, scratch_operands = 0 : i64, tpu.core_type = #tpu.core_type<tc>, window_params = [{transform_indices = @transform_0, window_bounds = array<i64: 128, 128>}, {pipeline_mode = #tpu.pipeline_mode<synchronous>, transform_indices = @transform_1, window_bounds = array<i64: 128, 128>}, {transform_indices = @transform_2, window_bounds = array<i64: 128, 128>}, {pipeline_mode = #tpu.pipeline_mode<synchronous>, transform_indices = @transform_3, window_bounds = array<i64: 2, 128>}]} {
    %c0 = arith.constant 0 : index
    %c0_0 = arith.constant 0 : index
    %0 = vector.load %arg1[%c0, %c0_0] : memref<128x128xf32, #tpu.memory_space<vmem>>, vector<128x128xf32>
    %c0_1 = arith.constant 0 : index
    %c0_2 = arith.constant 0 : index
    %1 = vector.load %arg2[%c0_1, %c0_2] : memref<128x128xf32, #tpu.memory_space<vmem>>, vector<128x128xf32>
    %cst = arith.constant dense<0.000000e+00> : vector<128x128xf32>
    %2 = tpu.matmul %0, %1, %cst {dimension_numbers = #tpu.dot_dimension_numbers<[1], [0], [0], [1], [0, 0, 1, 1], [], []>} : vector<128x128xf32>, vector<128x128xf32>, vector<128x128xf32> -> vector<128x128xf32>
    %cst_3 = arith.constant dense<0.000000e+00> : vector<128xf32>
    %3 = vector.multi_reduction <add>, %2, %cst_3 [0] : vector<128x128xf32> to vector<128xf32>
    %4 = vector.shape_cast %3 : vector<128xf32> to vector<1x128xf32>
    %5 = arith.mulf %2, %2 : vector<128x128xf32>
    %cst_4 = arith.constant dense<0.000000e+00> : vector<128xf32>
    %6 = vector.multi_reduction <add>, %5, %cst_4 [0] : vector<128x128xf32> to vector<128xf32>
    %7 = vector.shape_cast %6 : vector<128xf32> to vector<1x128xf32>
    %c0_i32 = arith.constant 0 : i32
    %8 = arith.cmpi eq, %arg0, %c0_i32 : i32
    %9 = arith.extui %8 : i1 to i32
    %c0_i32_5 = arith.constant 0 : i32
    %10 = arith.cmpi ne, %9, %c0_i32_5 : i32
    scf.if %10 {
      %cst_12 = arith.constant 0.000000e+00 : f32
      %16 = vector.broadcast %cst_12 : f32 to vector<2x128xf32>
      %c0_13 = arith.constant 0 : index
      %c0_14 = arith.constant 0 : index
      %17 = vector.load %arg4[%c0_13, %c0_14] : memref<2x128xf32, #tpu.memory_space<vmem>>, vector<2x128xf32>
      tpu.vector_store %arg4[%c0_13, %c0_14], %16 {strides = array<i32>} : memref<2x128xf32, #tpu.memory_space<vmem>>, vector<2x128xf32>,
    } else {
    }
    %c0_6 = arith.constant 0 : index
    %c0_7 = arith.constant 0 : index
    %11 = vector.load %arg4[%c0_6, %c0_7] : memref<2x128xf32, #tpu.memory_space<vmem>>, vector<2x128xf32>
    %12 = tpu.concatenate %4, %7 in 0 : vector<1x128xf32>, vector<1x128xf32> -> vector<2x128xf32>
    %13 = arith.addf %11, %12 : vector<2x128xf32>
    %c0_8 = arith.constant 0 : index
    %c0_9 = arith.constant 0 : index
    %14 = vector.load %arg4[%c0_8, %c0_9] : memref<2x128xf32, #tpu.memory_space<vmem>>, vector<2x128xf32>
    tpu.vector_store %arg4[%c0_8, %c0_9], %13 {strides = array<i32>} : memref<2x128xf32, #tpu.memory_space<vmem>>, vector<2x128xf32>,
    %c0_10 = arith.constant 0 : index
    %c0_11 = arith.constant 0 : index
    %15 = vector.load %arg3[%c0_10, %c0_11] : memref<128x128xf32, #tpu.memory_space<vmem>>, vector<128x128xf32>
    tpu.vector_store %arg3[%c0_10, %c0_11], %2 {strides = array<i32>} : memref<128x128xf32, #tpu.memory_space<vmem>>, vector<128x128xf32>,
    return
  }
  func.func @transform_0(%arg0: i32) -> (i32, i32) {
    %c0_i32 = arith.constant 0 : i32
    %c0_i32_0 = arith.constant 0 : i32
    return %arg0, %c0_i32 : i32, i32
  }
  func.func @transform_1(%arg0: i32) -> (i32, i32) {
    %c0_i32 = arith.constant 0 : i32
    %c0_i32_0 = arith.constant 0 : i32
    %c0_i32_1 = arith.constant 0 : i32
    return %c0_i32, %c0_i32_0 : i32, i32
  }
  func.func @transform_2(%arg0: i32) -> (i32, i32) {
    %c0_i32 = arith.constant 0 : i32
    %c0_i32_0 = arith.constant 0 : i32
    return %arg0, %c0_i32 : i32, i32
  }
  func.func @transform_3(%arg0: i32) -> (i32, i32) {
    %c0_i32 = arith.constant 0 : i32
    %c0_i32_0 = arith.constant 0 : i32
    %c0_i32_1 = arith.constant 0 : i32
    return %c0_i32, %c0_i32_0 : i32, i32
  }
}

</mosaic_0001>

<bundles_post_ra>
// kernel: tpu_custom_call.1
= control target key start
LH: loop header
LB: loop body
LE: loop exit
PB: predicated region body
PF: predicated region fallthrough
CT: control target
= control target key end

     0   :  { %9 = vsyncpa [#allocation3], 0  ;;  %s1330_s0 = inlined_call_operand.hbm [shape: f32[512,128], index: 0, kind: input, shape index: {}]   ;;  %s1331_s1 = inlined_call_operand.hbm [shape: f32[128,128], index: 1, kind: input, shape index: {}]   ;;  %s1332_s2 = inlined_call_operand.hbm [shape: f32[512,128], index: 2, kind: output, shape index: {0}]   ;;  %s1333_s3 = inlined_call_operand.hbm [shape: f32[2,128], index: 3, kind: output, shape index: {1}]  }
   0x1   :  { %11 = vsyncpa [#allocation3 + $0x1], 0 }
   0x2   :  { %12 = vsyncpa [#allocation6], 0 }
   0x3   :  { %13 = vsyncpa [#allocation4], 0 }
   0x4   :  { %15 = vsyncpa [#allocation4 + $0x1], 0 }
   0x5   :  { %16 = vsyncpa [#allocation9], 0  ;;  %s1000_s12 = smov 0   ;;  %s1002_s13 = smov 0  }
   0x6   :  { %s1004_s14 = smov 0   ;;  %s1006_s15 = smov 0  }
   0x7 LB: > { %s1021_s16 = sadd.s32 4294967295, %s969_s15   ;;  %s585_s17 = sadd.s32 4294967294, %s969_s15   ;;  %s969_s15 = sphi %s1006_s15, %s1358_s15   ;;  %s965_s14 = sphi %s1004_s14, %s1357_s14   ;;  %s961_s13 = sphi %s1002_s13, %s1356_s13   ;;  %s957_s12 = sphi %s1000_s12, %s1355_s12  }
   0x8   : > { %p42_p0 = scmp.ne.s32.totalorder %s961_s13, %s957_s12  ;;  %p1334_p1 = scmp.eq.s32.totalorder %s1021_s16, 0 }
   0x9   : > { %p93_p3 = scmp.eq.s32.totalorder %s585_s17, 3  ;;  %p586_p5 = scmp.ge.s32.totalorder %s969_s15, 1 }
   0xa   : > { %p1030_p4 = por %p1334_p1, %p42_p0  ;;  %p121_p7 = scmp.lt.s32.totalorder %s969_s15, 5 }
   0xb   : > { %p1035_p6 = por %p93_p3, %p42_p0  ;;  %s971_s21 = smov [#allocation5]  }
   0xc   : > { %s1337_s18 = scalar_select %p1030_p4, 1, 0 }
   0xd   : > { %s1338_s19 = scalar_select %p1035_p6, 1, 0 }
   0xe   : > { %p1041_p9 = pnand %p586_p5, %p121_p7  ;;  %s133_s22 = sshll.u32 %s971_s21, 4  ;;  %s134_s22 = int_to_ptr.vmem [resolvable:$true] %s133_s22 }
   0xf   : > { %s1054_s24 = sadd.s32 1, %s969_s15   ;;  %s29_s25 = sadd.s32 1, %s965_s14 }
  0x10   : > { %s1339_s20 = scalar_select %p1041_p9, 1, 0 }
  0x11   : > { %p754_p10 = pneg %p1041_p9  ;;  %s26_s26 = ssub.s32 %s969_s15, %s1054_s24 }
  0x12   : > { %s811_s29 = scalar_lea.hbm %s1331_s1, 2048 }
  0x13   : > { %p1049_p11 = pnand %p754_p10, %p1334_p1  ;;  %p812_p12 = scmp.ne.s32.totalorder %s1331_s1, %s811_s29 }
  0x14   : > { %p818_p5 = scmp.lt.u32.totalorder %s811_s29, %s1331_s1 }
  0x15   : > { %p813_p13 = pneg %p1049_p11 }
  0x17   : > { %p814_p0 = pnand %p813_p13, %p812_p12 }
  0x19   : > { %p815_p3 = pneg %p814_p0 }
  0x1b   : > { %p820_p7 = pnand %p818_p5, %p815_p3 }
  0x1d   : > { %823 = shalt.err (!%p820_p7)
}
  0x1e   : > { %s824_s7 = scalar_lea.vmem %s134_s22, 2048  ;;  %p832_p2 = scmp.lt.s32.totalorder %s134_s22, %s134_s22 }
  0x1f   : > { %p825_p10 = scmp.ne.s32.totalorder %s134_s22, %s824_s7  ;;  %p833_p6 = scmp.lt.s32.totalorder %s824_s7, %s824_s7 }
  0x21   : > { %p827_p8 = pnand %p825_p10, %p813_p13  ;;  %p834_p4 = por %p833_p6, %p832_p2 }
  0x23   : > { %p828_p1 = pneg %p827_p8 }
  0x25   : > { %p835_p9 = pnand %p834_p4, %p828_p1 }
  0x27   : > { %838 = shalt.err (!%p835_p9)
}
  0x28   : > { %s972_s8 = smov 128   ;;  %s973_s9 = smov 8  }
  0x29   : > { %757 = dma.hbm_to_vmem [thread:$0]  (!%p1049_p11), %s1331_s1, 2048, %s134_s22, [#allocation6], %s972_s8, %s972_s8, %s973_s9  }
  0x2a   : > { %p27_p1 = scmp.eq.s32.totalorder %s26_s26, 0  ;;  %p36_p2 = scmp.ne.s32.totalorder %s965_s14, %s961_s13 }
  0x2b   : > { %p37_p4 = scmp.eq.s32.totalorder %s969_s15, 0  ;;  %p767_p6 = scmp.lt.s32.totalorder %s969_s15, 4 }
  0x2c   : > { %s1083_s17 = scalar_select %p27_p1, %s965_s14, %s29_s25  }
  0x2d   : > { %p38_p8 = por %p37_p4, %p36_p2  ;;  %p1341_p9 = scmp.eq.s32.totalorder %s1021_s16, 3 }
  0x2e   : > { %s147_s23 = sand.u32 1, %s965_s14   ;;  %s604_s27 = sshll.u32 %s969_s15, 11 }
  0x2f   : > { %p1087_p12 = por %p1341_p9, %p36_p2  ;;  %s589_s28 = sshll.u32 %s147_s23, 7 }
  0x30   : > { %s1096_s4 = scalar_lea.hbm %s1330_s0, %s604_s27  ;;  %s151_s22 = scalar_lea.vmem [#allocation2], %s589_s28 }
  0x31   : > { %s158_s25 = sshll.u32 %s151_s22, 4  ;;  %p1098_p11 = pnand %p767_p6, %p38_p8  ;;  %s1102_s25 = int_to_ptr.vmem [resolvable:$true] %s158_s25 }
  0x32   : > { %s1104_s5 = scalar_lea.sflag [#allocation3], %s147_s23  ;;  %s839_s6 = scalar_lea.hbm %s1096_s4, 2048 }
  0x33   : > { %p840_p13 = scmp.ne.s32.totalorder %s1096_s4, %s839_s6  ;;  %p841_p0 = pneg %p1098_p11 }
  0x34   : > { %s844_s11 = scalar_lea.hbm %s1330_s0, 8192  ;;  %p845_p7 = scmp.lt.u32.totalorder %s1096_s4, %s1330_s0 }
  0x35   : > { %p842_p3 = pnand %p841_p0, %p840_p13  ;;  %p846_p10 = scmp.lt.u32.totalorder %s844_s11, %s839_s6 }
  0x36   : > { %p848_p2 = scmp.lt.u32.totalorder %s839_s6, %s1096_s4 }
  0x37   : > { %p843_p5 = pneg %p842_p3  ;;  %p847_p1 = por %p846_p10, %p845_p7 }
  0x39   : > { %p849_p4 = por %p848_p2, %p847_p1 }
  0x3b   : > { %p850_p6 = pnand %p849_p4, %p843_p5 }
  0x3d   : > { %853 = shalt.err (!%p850_p6)
}
  0x3e   : > { %s854_s23 = scalar_lea.vmem %s1102_s25, 2048  ;;  %s974_s29 = smov [#allocation2]  }
  0x3f   : > { %p855_p8 = scmp.ne.s32.totalorder %s1102_s25, %s854_s23  ;;  %s859_s30 = sshll.u32 %s974_s29, 4  ;;  %s860_s30 = int_to_ptr.vmem [resolvable:$false] %s859_s30 }
  0x40   : > { %s861_s22 = scalar_lea.vmem %s860_s30, 4096  ;;  %p862_p3 = scmp.lt.s32.totalorder %s1102_s25, %s860_s30 }
  0x41   : > { %p857_p9 = pnand %p855_p8, %p841_p0  ;;  %p863_p7 = scmp.lt.s32.totalorder %s861_s22, %s854_s23 }
  0x43   : > { %p858_p13 = pneg %p857_p9  ;;  %p864_p10 = por %p863_p7, %p862_p3 }
  0x45   : > { %p865_p1 = pnand %p864_p10, %p858_p13 }
  0x47   : > { %868 = shalt.err (!%p865_p1)
}
  0x48   : > { %761 = dma.hbm_to_vmem [thread:$0]  (!%p1098_p11), %s1096_s4, 2048, %s1102_s25, %s1104_s5, %s972_s8, %s972_s8, %s973_s9  }
  0x49   : > { %p1344_p0 = scmp.ne.s32.totalorder %s1339_s20, 0 }
  0x4a   : > { %s1138_s6 = sand.u32 (!%p1344_p0), 1, %s961_s13   ;;  %p1345_p5 = scmp.ne.s32.totalorder (!%p1344_p0), %s1337_s18, 0 }
  0x4b   : > { %170 = sbr.rel (%p1344_p0) target bundleno = 432 (0x1b0), region = 28  ;;  %s593_s7 = sshll.u32 (!%p1344_p0), %s1138_s6, 7 }
  0x4c   : > { %s173_s10 = scalar_lea.sflag (!%p1344_p0), [#allocation3], %s1138_s6  ;;  %s1144_s26 = scalar_lea.vmem (!%p1344_p0), [#allocation2], %s593_s7 }
  0x52   : > { %940 = dma.done.wait (%p1345_p5), %s173_s10, 2048  }
  0x53   : > { %942 = vsyncadd (%p1345_p5), %s173_s10, 4294965248  ;;  %p1346_p11 = scmp.eq.s32.totalorder %s1021_s16, 0 }
  0x55   : > { %944 = dma.done.wait (%p1346_p11), [#allocation6], 2048   ;;  %p1347_p2 = pmov %p1346_p11 }
  0x56   : > { %v221_v0 = vld [vmem:[#allocation5] sm:$0xff]  ;;  %v222_v1 = vld [vmem:[#allocation5 + $0x8] sm:$0xff]  ;;  %v223_v2 = vld [vmem:[#allocation5 + $0x10] sm:$0xff]  ;;  %s200_s18 = scalar_lea.vmem [#allocation7], %s593_s7  ;;  %p1348_p4 = scmp.ne.s32.totalorder %s1021_s16, 0 }
  0x57   : > { %946 = vsyncadd (%p1347_p2), [#allocation6], 4294965248  ;;  %v694_v3 = vpack.c.bf16 %v222_v1, %v221_v0  ;;  %v224_v4 = vld [vmem:[#allocation5 + $0x18] sm:$0xff]  ;;  %v225_v6 = vld [vmem:[#allocation5 + $0x20] sm:$0xff] }
  0x58   : > { %v698_v5 = vpack.c.bf16 %v224_v4, %v223_v2  ;;  %v226_v7 = vld [vmem:[#allocation5 + $0x28] sm:$0xff]  ;;  %v205_v9 = vld [vmem:[%s1144_s26] sm:$0xff]  ;;  %v227_v10 = vld [vmem:[#allocation5 + $0x30] sm:$0xff] }
  0x59   : > { %695 = vmatprep.subr.bf16.mxu0 %v694_v3  ;;  %726 = vmatprep.subr.bf16.mxu1 %v694_v3  ;;  %v702_v8 = vpack.c.bf16 %v226_v7, %v225_v6  ;;  %v228_v11 = vld [vmem:[#allocation5 + $0x38] sm:$0xff]  ;;  %v213_v12 = vld [vmem:[%s1144_s26 + $0x40] sm:$0xff]  ;;  %v230_v15 = vld [vmem:[#allocation5 + $0x48] sm:$0xff] }
  0x5a   : > { %697 = vmatpush3.bf16.msra.mxu0 %v694_v3  ;;  %734 = vmatpush3.bf16.msra.mxu1 %v694_v3  ;;  %v706_v13 = vpack.c.bf16 %v228_v11, %v227_v10  ;;  %v229_v14 = vld [vmem:[#allocation5 + $0x40] sm:$0xff]  ;;  %v231_v17 = vld [vmem:[#allocation5 + $0x50] sm:$0xff]  ;;  %v232_v18 = vld [vmem:[#allocation5 + $0x58] sm:$0xff] }
  0x5b   : > { %699 = vmatprep.subr.bf16.mxu0 %v698_v5  ;;  %727 = vmatprep.subr.bf16.mxu1 %v698_v5  ;;  %v710_v16 = vpack.c.bf16 %v230_v15, %v229_v14  ;;  %v714_v19 = vpack.c.bf16 %v232_v18, %v231_v17  ;;  %v233_v20 = vld [vmem:[#allocation5 + $0x60] sm:$0xff]  ;;  %v234_v21 = vld [vmem:[#allocation5 + $0x68] sm:$0xff]  ;;  %v235_v23 = vld [vmem:[#allocation5 + $0x70] sm:$0xff] }
  0x5c   : > { %670 = vmatprep.mubr.f32.mxu0 %v205_v9  ;;  %682 = vmatprep.mubr.f32.mxu1 %v213_v12  ;;  %v718_v22 = vpack.c.bf16 %v234_v21, %v233_v20  ;;  %v236_v24 = vld [vmem:[#allocation5 + $0x78] sm:$0xff]  ;;  %v206_v26 = vld [vmem:[%s1144_s26 + $0x8] sm:$0xff]  ;;  %v207_v28 = vld [vmem:[%s1144_s26 + $0x10] sm:$0xff] }
  0x5d   : > { %v722_v25 = vpack.c.bf16 %v236_v24, %v235_v23  ;;  %v214_v27 = vld [vmem:[%s1144_s26 + $0x48] sm:$0xff]  ;;  %v215_v29 = vld [vmem:[%s1144_s26 + $0x50] sm:$0xff]  ;;  %v208_v30 = vld [vmem:[%s1144_s26 + $0x18] sm:$0xff] }
  0x5e   : > { %701 = vmatpush3.bf16.msra.mxu0 %v698_v5  ;;  %735 = vmatpush3.bf16.msra.mxu1 %v698_v5  ;;  %v216_v31 = vld [vmem:[%s1144_s26 + $0x58] sm:$0xff]  ;;  %v209_v32 = vld [vmem:[%s1144_s26 + $0x20] sm:$0xff]  ;;  %v210_v34 = vld [vmem:[%s1144_s26 + $0x28] sm:$0xff] }
  0x5f   : > { %703 = vmatprep.subr.bf16.mxu0 %v702_v8  ;;  %728 = vmatprep.subr.bf16.mxu1 %v702_v8  ;;  %v217_v33 = vld [vmem:[%s1144_s26 + $0x60] sm:$0xff]  ;;  %v218_v35 = vld [vmem:[%s1144_s26 + $0x68] sm:$0xff]  ;;  %v211_v36 = vld [vmem:[%s1144_s26 + $0x30] sm:$0xff] }
  0x60   : > { %v219_v37 = vld [vmem:[%s1144_s26 + $0x70] sm:$0xff]  ;;  %v212_v38 = vld [vmem:[%s1144_s26 + $0x38] sm:$0xff] }
  0x61   : > { %v220_v39 = vld [vmem:[%s1144_s26 + $0x78] sm:$0xff] }
  0x62   : > { %705 = vmatpush3.bf16.msra.mxu0 %v702_v8  ;;  %736 = vmatpush3.bf16.msra.mxu1 %v702_v8 }
  0x63   : > { %707 = vmatprep.subr.bf16.mxu0 %v706_v13  ;;  %729 = vmatprep.subr.bf16.mxu1 %v706_v13 }
  0x66   : > { %709 = vmatpush3.bf16.msra.mxu0 %v706_v13  ;;  %737 = vmatpush3.bf16.msra.mxu1 %v706_v13 }
  0x67   : > { %711 = vmatprep.subr.bf16.mxu0 %v710_v16  ;;  %730 = vmatprep.subr.bf16.mxu1 %v710_v16 }
  0x6a   : > { %713 = vmatpush3.bf16.msra.mxu0 %v710_v16  ;;  %738 = vmatpush3.bf16.msra.mxu1 %v710_v16 }
  0x6b   : > { %715 = vmatprep.subr.bf16.mxu0 %v714_v19  ;;  %731 = vmatprep.subr.bf16.mxu1 %v714_v19 }
  0x6e   : > { %717 = vmatpush3.bf16.msra.mxu0 %v714_v19  ;;  %739 = vmatpush3.bf16.msra.mxu1 %v714_v19 }
  0x6f   : > { %719 = vmatprep.subr.bf16.mxu0 %v718_v22  ;;  %732 = vmatprep.subr.bf16.mxu1 %v718_v22 }
  0x72   : > { %721 = vmatpush3.bf16.msra.mxu0 %v718_v22  ;;  %740 = vmatpush3.bf16.msra.mxu1 %v718_v22 }
  0x73   : > { %723 = vmatprep.subr.bf16.mxu0 %v722_v25  ;;  %733 = vmatprep.subr.bf16.mxu1 %v722_v25 }
  0x76   : > { %725 = vmatpush3.bf16.msra.mxu0 %v722_v25  ;;  %741 = vmatpush3.bf16.msra.mxu1 %v722_v25 }
  0x79   : > { %671 = vmatmul.mubr.f32.vlgmr.msra.gmra.mrb[0].mxu0 %v206_v26  ;;  %683 = vmatmul.mubr.f32.vlgmr.msra.gmra.mrb[0].mxu1 %v214_v27 }
  0x7a   : > { %673 = vmatprep.mubr.f32.mxu0 %v207_v28  ;;  %685 = vmatprep.mubr.f32.mxu1 %v215_v29 }
  0x7d   : > { %674 = vmatmul.mubr.f32.gmra.mrb[2].mxu0 %v208_v30  ;;  %686 = vmatmul.mubr.f32.gmra.mrb[2].mxu1 %v216_v31 }
  0x7e   : > { %676 = vmatprep.mubr.f32.mxu0 %v209_v32  ;;  %688 = vmatprep.mubr.f32.mxu1 %v217_v33 }
  0x81   : > { %677 = vmatmul.mubr.f32.gmra.mrb[4].mxu0 %v210_v34  ;;  %689 = vmatmul.mubr.f32.gmra.mrb[4].mxu1 %v218_v35 }
  0x82   : > { %679 = vmatprep.mubr.f32.mxu0 %v211_v36  ;;  %691 = vmatprep.mubr.f32.mxu1 %v219_v37 }
  0x85   : > { %680 = vmatmul.mubr.f32.gmra.mrb[6].mxu0 %v212_v38  ;;  %692 = vmatmul.mubr.f32.gmra.mrb[6].mxu1 %v220_v39 }
 0x14c   : > { %v1170_v40 = vpop.f32.mrb[0].mxu0  ;;  %v1172_v41 = vpop.f32.mrb[0].mxu1 }
 0x14d   : > { %v404_v42 = vmul.f32 %v1170_v40, %v1170_v40  ;;  %v1176_v43 = vpop.f32.mrb[1].mxu0  ;;  %v1178_v44 = vpop.f32.mrb[1].mxu1  ;;  %v412_v16 = vmul.f32 %v1172_v41, %v1172_v41 }
 0x14e   : > { %v382_v45 = vadd.f32 %v1170_v40, %v1176_v43  ;;  %v403_v46 = vmul.f32 %v1176_v43, %v1176_v43  ;;  %v411_v13 = vmul.f32 %v1178_v44, %v1178_v44 }
 0x150   : > { %v419_v47 = vadd.f32 %v404_v42, %v403_v46  ;;  %v1184_v48 = vpop.f32.mrb[2].mxu0  ;;  %v1186_v49 = vpop.f32.mrb[2].mxu1 }
 0x151   : > { %v1188_v50 = vpop.f32.mrb[3].mxu0  ;;  %v1190_v51 = vpop.f32.mrb[3].mxu1  ;;  %v406_v54 = vmul.f32 %v1184_v48, %v1184_v48  ;;  %v414_v22 = vmul.f32 %v1186_v49, %v1186_v49 }
 0x152   : > { %v383_v52 = vadd.f32 %v382_v45, %v1188_v50  ;;  %v405_v53 = vmul.f32 %v1188_v50, %v1188_v50  ;;  %v413_v19 = vmul.f32 %v1190_v51, %v1190_v51 }
 0x154   : > { %v420_v55 = vadd.f32 %v419_v47, %v405_v53  ;;  %v1197_v56 = vpop.f32.mrb[4].mxu0  ;;  %v384_v57 = vadd.f32 %v1184_v48, %v383_v52  ;;  %v1200_v58 = vpop.f32.mrb[4].mxu1 }
 0x155   : > { %v1202_v59 = vpop.f32.mrb[5].mxu0  ;;  %v1204_v60 = vpop.f32.mrb[5].mxu1  ;;  %v408_v0 = vmul.f32 %v1197_v56, %v1197_v56  ;;  %v416_v28 = vmul.f32 %v1200_v58, %v1200_v58 }
 0x156   : > { %v385_v61 = vadd.f32 %v384_v57, %v1202_v59  ;;  %v407_v62 = vmul.f32 %v1202_v59, %v1202_v59  ;;  %v421_v63 = vadd.f32 %v420_v55, %v406_v54  ;;  %v415_v25 = vmul.f32 %v1204_v60, %v1204_v60 }
 0x158   : > { %v422_v1 = vadd.f32 %v421_v63, %v407_v62  ;;  %v681_v2 = vpop.f32.mrb[6].mxu0  ;;  %v386_v3 = vadd.f32 %v1197_v56, %v385_v61  ;;  %v1212_v4 = vpop.f32.mrb[6].mxu1  ;;  %v975_v62 = vmov (!%p1348_p4), 0.0  }
 0x159   : > { %v333_v5 = vpop.f32.mrb[7].mxu0  ;;  %v1214_v6 = vpop.f32.mrb[7].mxu1  ;;  %v410_v10 = vmul.f32 %v681_v2, %v681_v2  ;;  %v418_v34 = vmul.f32 %v1212_v4, %v1212_v4  ;;  %444 = vst [vmem:[#allocation8] sm:$0x3] (!%p1348_p4), %v975_v62 }
 0x15a   : > { %v387_v7 = vadd.f32 %v386_v3, %v333_v5  ;;  %v409_v8 = vmul.f32 %v333_v5, %v333_v5  ;;  %v423_v9 = vadd.f32 %v422_v1, %v408_v0  ;;  %v417_v31 = vmul.f32 %v1214_v6, %v1214_v6 }
 0x15c   : > { %v388_v11 = vadd.f32 %v681_v2, %v387_v7  ;;  %v424_v12 = vadd.f32 %v423_v9, %v409_v8 }
 0x15e   : > { %v425_v14 = vadd.f32 %v424_v12, %v410_v10  ;;  %v389_v15 = vadd.f32 %v388_v11, %v1178_v44 }
 0x160   : > { %v426_v17 = vadd.f32 %v425_v14, %v411_v13  ;;  %v390_v18 = vadd.f32 %v1172_v41, %v389_v15 }
 0x162   : > { %v391_v20 = vadd.f32 %v390_v18, %v1190_v51  ;;  %v427_v21 = vadd.f32 %v426_v17, %v412_v16 }
 0x164   : > { %v428_v23 = vadd.f32 %v427_v21, %v413_v19  ;;  %v392_v24 = vadd.f32 %v1186_v49, %v391_v20 }
 0x166   : > { %v393_v26 = vadd.f32 %v392_v24, %v1204_v60  ;;  %v429_v27 = vadd.f32 %v428_v23, %v414_v22 }
 0x168   : > { %v430_v29 = vadd.f32 %v429_v27, %v415_v25  ;;  %v394_v30 = vadd.f32 %v1200_v58, %v393_v26 }
 0x16a   : > { %v395_v32 = vadd.f32 %v394_v30, %v1214_v6  ;;  %v431_v33 = vadd.f32 %v430_v29, %v416_v28 }
 0x16c   : > { %v396_v35 = vadd.f32 %v1212_v4, %v395_v32  ;;  %v432_v36 = vadd.f32 %v431_v33, %v417_v31 }
 0x16e   : > { %v397_v37 = vrot.slane %v396_v35, 4  ;;  %v433_v38 = vadd.f32 %v432_v36, %v418_v34 }
 0x170   : > { %v398_v39 = vadd.f32 %v397_v37, %v396_v35  ;;  %v434_v42 = vrot.slane %v433_v38, 4 }
 0x172   : > { %v399_v45 = vrot.slane %v398_v39, 2  ;;  %v435_v46 = vadd.f32 %v434_v42, %v433_v38 }
 0x174   : > { %v400_v47 = vadd.f32 %v399_v45, %v398_v39  ;;  %v436_v52 = vrot.slane %v435_v46, 2  ;;  %443 = sbr.rel (%p1348_p4) target bundleno = 379 (0x17b), region = 40 }
 0x176   : > { %v401_v53 = vrot.slane %v400_v47, 1  ;;  %v437_v54 = vadd.f32 %v436_v52, %v435_v46 }
 0x178   : > { %v402_v55 = vadd.f32 %v401_v53, %v400_v47  ;;  %v438_v57 = vrot.slane %v437_v54, 1 }
 0x17a   : > { %v439_v61 = vadd.f32 %v438_v57, %v437_v54 }
 0x17b PF: > { %v445_v63 = vld [vmem:[#allocation8] sm:$0x3]  ;;  %vm446_vm0 = vcmask 1040384   ;;  %450 = vst [vmem:[%s200_s18] sm:$0xff] %v1176_v43  ;;  %451 = vst [vmem:[%s200_s18 + $0x8] sm:$0xff] %v1170_v40  ;;  %s605_s20 = sshll.u32 %s1021_s16, 11  ;;  %s480_s25 = sshll.u32 %s200_s18, 4  ;;  %s1265_s25 = int_to_ptr.vmem [resolvable:$true] %s480_s25 }
 0x17c   : > { %452 = vst [vmem:[%s200_s18 + $0x10] sm:$0xff] %v1188_v50  ;;  %453 = vst [vmem:[%s200_s18 + $0x18] sm:$0xff] %v1184_v48  ;;  %v447_v40 = vsel %vm446_vm0, %v402_v55, %v439_v61  ;;  %s1263_s4 = scalar_lea.hbm %s1332_s2, %s605_s20  ;;  %s467_s5 = scalar_lea.sflag [#allocation4], %s1138_s6 }
 0x17d   : > { %454 = vst [vmem:[%s200_s18 + $0x20] sm:$0xff] %v1202_v59  ;;  %455 = vst [vmem:[%s200_s18 + $0x28] sm:$0xff] %v1197_v56  ;;  %s869_s11 = scalar_lea.vmem %s1265_s25, 2048  ;;  %s976_s27 = smov [#allocation7]  }
 0x17e   : > { %456 = vst [vmem:[%s200_s18 + $0x30] sm:$0xff] %v333_v5  ;;  %457 = vst [vmem:[%s200_s18 + $0x38] sm:$0xff] %v681_v2  ;;  %p870_p6 = scmp.ne.s32.totalorder %s1265_s25, %s869_s11  ;;  %s873_s28 = sshll.u32 %s976_s27, 4  ;;  %s874_s28 = int_to_ptr.vmem [resolvable:$false] %s873_s28 }
 0x17f   : > { %458 = vst [vmem:[%s200_s18 + $0x40] sm:$0xff] %v1178_v44  ;;  %459 = vst [vmem:[%s200_s18 + $0x48] sm:$0xff] %v1172_v41  ;;  %v448_v41 = vadd.f32 %v447_v40, %v445_v63  ;;  %s875_s23 = scalar_lea.vmem %s874_s28, 4096  ;;  %p876_p13 = scmp.lt.s32.totalorder %s1265_s25, %s874_s28 }
 0x180   : > { %460 = vst [vmem:[%s200_s18 + $0x50] sm:$0xff] %v1190_v51  ;;  %461 = vst [vmem:[%s200_s18 + $0x58] sm:$0xff] %v1186_v49  ;;  %p871_p8 = pnand %p870_p6, %p1087_p12  ;;  %p877_p3 = scmp.lt.s32.totalorder %s875_s23, %s869_s11 }
 0x181   : > { %462 = vst [vmem:[%s200_s18 + $0x60] sm:$0xff] %v1204_v60  ;;  %463 = vst [vmem:[%s200_s18 + $0x68] sm:$0xff] %v1200_v58 }
 0x182   : > { %464 = vst [vmem:[%s200_s18 + $0x70] sm:$0xff] %v1214_v6  ;;  %465 = vst [vmem:[%s200_s18 + $0x78] sm:$0xff] %v1212_v4  ;;  %p872_p9 = pneg %p871_p8  ;;  %p878_p7 = por %p877_p3, %p876_p13 }
 0x183   : > { %449 = vst [vmem:[#allocation8] sm:$0x3] %v448_v41 }
 0x184   : > { %p879_p10 = pnand %p878_p7, %p872_p9 }
 0x186   : > { %882 = shalt.err (!%p879_p10)
}
 0x187   : > { %s883_s29 = scalar_lea.hbm %s1263_s4, 2048  ;;  %s887_s7 = scalar_lea.hbm %s1332_s2, 8192 }
 0x188   : > { %p884_p1 = scmp.ne.s32.totalorder %s1263_s4, %s883_s29  ;;  %p888_p11 = scmp.lt.u32.totalorder %s1263_s4, %s1332_s2 }
 0x189   : > { %p889_p2 = scmp.lt.u32.totalorder %s887_s7, %s883_s29  ;;  %p891_p6 = scmp.lt.u32.totalorder %s883_s29, %s1263_s4 }
 0x18a   : > { %p885_p0 = pnand %p884_p1, %p1087_p12 }
 0x18b   : > { %p890_p4 = por %p889_p2, %p888_p11 }
 0x18c   : > { %p886_p5 = pneg %p885_p0 }
 0x18d   : > { %p892_p8 = por %p891_p6, %p890_p4 }
 0x18f   : > { %p893_p9 = pnand %p892_p8, %p886_p5 }
 0x191   : > { %896 = shalt.err (!%p893_p9)
}
 0x192   : > { %s977_s18 = smov 128   ;;  %s978_s20 = smov 8  }
 0x193   : > { %748 = dma.vmem_to_hbm [thread:$0]  (%p1087_p12), %s1265_s25, 2048, %s1263_s4, %s467_s5, %s977_s18, %s977_s18, %s978_s20  }
 0x194   : > { %s979_s8 = smov [#allocation8]   ;;  %p1349_p3 = scmp.eq.s32.totalorder %s1021_s16, 3 }
 0x195   : > { %s494_s9 = sshll.u32 %s979_s8, 4  ;;  %s495_s9 = int_to_ptr.vmem [resolvable:$true] %s494_s9 }
 0x196   : > { %s897_s11 = scalar_lea.vmem %s495_s9, 32  ;;  %p904_p1 = scmp.lt.s32.totalorder %s495_s9, %s495_s9 }
 0x197   : > { %p898_p13 = scmp.ne.s32.totalorder %s495_s9, %s897_s11  ;;  %p905_p0 = scmp.lt.s32.totalorder %s897_s11, %s897_s11 }
 0x199   : > { %p899_p7 = pnand %p898_p13, %p1349_p3  ;;  %p906_p5 = por %p905_p0, %p904_p1 }
 0x19b   : > { %p900_p10 = pneg %p899_p7 }
 0x19d   : > { %p907_p11 = pnand %p906_p5, %p900_p10 }
 0x19f   : > { %910 = shalt.err (!%p907_p11)
}
 0x1a0   : > { %s911_s21 = scalar_lea.hbm %s1333_s3, 32  ;;  %p1350_p2 = pmov %p1349_p3 }
 0x1a1   : > { %p912_p12 = scmp.ne.s32.totalorder %s1333_s3, %s911_s21  ;;  %p917_p8 = scmp.lt.u32.totalorder %s911_s21, %s1333_s3 }
 0x1a3   : > { %p913_p4 = pnand %p912_p12, %p1350_p2 }
 0x1a5   : > { %p914_p6 = pneg %p913_p4 }
 0x1a7   : > { %p919_p9 = pnand %p917_p8, %p914_p6 }
 0x1a9   : > { %922 = shalt.err (!%p919_p9)
}
 0x1aa   : > { %p1351_p13 = pmov %p1350_p2  ;;  %p1352_p3 = pmov %p1350_p2 }
 0x1ac   : > { %750 = dma.vmem_to_hbm [thread:$0]  (%p1351_p13), %s495_s9, 32, %s1333_s3, [#allocation9]  }
 0x1ad   : > { %948 = dma.done.wait (%p1352_p3), [#allocation9], 32   ;;  %p1353_p7 = pmov %p1350_p2 }
 0x1af   : > { %950 = vsyncadd (%p1353_p7), [#allocation9], 4294967264 }
 0x1b0 PF: > { %p771_p10 = scmp.ge.s32.totalorder %s969_s15, 2  ;;  %s510_s30 = sand.u32 1, %s957_s12  }
 0x1b1   : > { %p1354_p1 = scmp.ne.s32.totalorder %s1338_s19, 0  ;;  %s511_s22 = scalar_lea.sflag [#allocation4], %s510_s30 }
 0x1b3   : > { %p763_p0 = pnand %p771_p10, %p1354_p1 }
 0x1b5   : > { %952 = dma.done.wait (!%p763_p0), %s511_s22, 2048  }
 0x1b6   : > { %954 = vsyncadd (!%p763_p0), %s511_s22, 4294965248  ;;  %p19_p5 = scmp.ge.s32.totalorder %s1054_s24, 6   ;;  %s1355_s12 = smov %s961_s13 }
 0x1b7   : > { %s1356_s13 = smov %s965_s14  ;;  %s1357_s14 = smov %s1083_s17 }
 0x1b8   : > { %s1358_s15 = smov %s1054_s24  ;;  %21 = sbr.rel (!%p19_p5) target bundleno = 7 (0x7), region = 89 }
 0x1bf   :  { %516 = vsyncpa [#allocation3], 1 }
 0x1c0   :  { %518 = vsyncpa [#allocation3 + $0x1], 1 }
 0x1c1   :  { %519 = vsyncpa [#allocation6], 1 }
 0x1c2   :  { %520 = vsyncpa [#allocation4], 1 }
 0x1c3   :  { %522 = vsyncpa [#allocation4 + $0x1], 1 }
 0x1c4   :  { %523 = vsyncpa [#allocation9], 1 }

</bundles_post_ra>
